<compile_context>
chip_gen: v7x
topology: tpu7x:2x2x1
jax: 0.10.0
libtpu: 0.0.40
codegen_flags: <defaults>
</compile_context>

<pallas_src>
import jax
import jax.numpy as jnp
from jax.experimental import pallas as pl
from jax.experimental.pallas import tpu as pltpu


def _round_up(x, m):
    return ((x + m - 1) // m) * m


def _cls_head_kernel(x_ref, w_ref, b_ref, o_ref):
    # x_ref: (TM, H)     activation row tile, native dtype (cast here, not in XLA)
    # w_ref: (H, Cpad)   shared linear weight, pre-transposed, bf16
    # b_ref: (1, Cpad)   shared bias, f32
    # o_ref: (TM, Cpad)  logits
    x = x_ref[...].astype(jnp.bfloat16)            # in-kernel cast (HBM-bound; free)
    logits = jnp.dot(x, w_ref[...],
                     preferred_element_type=jnp.float32)   # f32 MXU accumulation
    o_ref[...] = (logits + b_ref[...]).astype(o_ref.dtype)


def classification_head_forward(hs, weight, bias, *, tm=2048,
                                out_dtype=jnp.float32,
                                vmem_budget=12 << 20):
    """hs: (L, B, Q, H); weight: (C, H); bias: (C,).

    Returns logits stacked as (L, B, Q, C); out[i] matches the PyTorch
    module's i-th list entry (same shared Linear applied to hs[i]).
    """
    L, B, Q, H = hs.shape
    C = weight.shape[0]
    R = L * B * Q

    # --- parameter prep (one-time, tiny HBM traffic) -------------------------
    # Pad the class dim to a lane-dense multiple of 128 only when it pays off
    # (real DETR C~91); skip for tiny C to avoid writeback inflation.
    C_pad = _round_up(C, 128) if (C > 64 and C % 128 != 0) else C
    wt = jnp.transpose(weight).astype(jnp.bfloat16)          # (H, C), canonical MXU RHS
    b2 = bias.astype(jnp.float32).reshape(1, C)
    if C_pad != C:
        wt = jnp.pad(wt, ((0, 0), (0, C_pad - C)))
        b2 = jnp.pad(b2, ((0, 0), (0, C_pad - C)))

    # --- activations: NO wrapper cast, NO row padding ------------------------
    x = hs.reshape(R, H)                                     # free metadata reshape
    in_itemsize = jnp.dtype(hs.dtype).itemsize
    out_itemsize = jnp.dtype(out_dtype).itemsize

    # --- row tile selection ---------------------------------------------------
    # Multiple of 16 (bf16 sublane packing), capped at tm, capped by VMEM budget,
    # and shrunk to give >= 2 grid steps when there is enough work (v7x: 2 TCs).
    tm_eff = min(tm, _round_up(R, 16))
    per_row_bytes = 2 * (H * in_itemsize + C_pad * out_itemsize)   # double-buffered
    max_rows_vmem = max(16, (vmem_budget // per_row_bytes) // 16 * 16)
    tm_eff = min(tm_eff, max_rows_vmem)
    if R > 32 and pl.cdiv(R, tm_eff) < 2:
        tm_eff = max(16, _round_up(pl.cdiv(R, 2), 16))

    grid = (pl.cdiv(R, tm_eff),)                              # ragged tail is masked

    cost = pl.CostEstimate(
        flops=2 * R * H * C_pad,
        transcendentals=0,
        bytes_accessed=(R * H * in_itemsize        # activations in (native dtype)
                        + H * C_pad * 2            # weight in (bf16)
                        + C_pad * 4                # bias in (f32)
                        + R * C_pad * out_itemsize))  # logits out

    out = pl.pallas_call(
        _cls_head_kernel,
        out_shape=jax.ShapeDtypeStruct((R, C_pad), out_dtype),
        grid_spec=pltpu.PrefetchScalarGridSpec(
            num_scalar_prefetch=0,
            grid=grid,
            in_specs=[
                pl.BlockSpec((tm_eff, H), lambda i: (i, 0)),     # row tile of x
                pl.BlockSpec((H, C_pad), lambda i: (0, 0)),      # resident weight
                pl.BlockSpec((1, C_pad), lambda i: (0, 0)),      # resident bias
            ],
            out_specs=pl.BlockSpec((tm_eff, C_pad), lambda i: (i, 0)),
        ),
        compiler_params=pltpu.CompilerParams(
            dimension_semantics=("parallel",)),
        cost_estimate=cost,
    )(x, wt, b2)

    if C_pad != C:
        out = out[:, :C]
    return out.reshape(L, B, Q, C)


if __name__ == "__main__":
    # Small shapes consistent with the module (num_queries chosen so the row
    # count is NOT a tile multiple -> exercises the masked ragged tail).
    num_layers = 6
    batch = 2
    num_queries = 10
    hidden_dim = 32
    num_classes = 2

    key = jax.random.PRNGKey(0)
    k_hs, k_w, k_b = jax.random.split(key, 3)

    hs = jax.random.normal(
        k_hs, (num_layers, batch, num_queries, hidden_dim), dtype=jnp.float32)

    # Deterministic "Linear" parameters (PyTorch default init scale).
    bound = 1.0 / (hidden_dim ** 0.5)
    weight = jax.random.uniform(
        k_w, (num_classes, hidden_dim), minval=-bound, maxval=bound,
        dtype=jnp.float32)
    bias = jax.random.uniform(
        k_b, (num_classes,), minval=-bound, maxval=bound, dtype=jnp.float32)

    out = classification_head_forward(hs, weight, bias)
    out = jax.block_until_ready(out)
    assert out.shape == (num_layers, batch, num_queries, num_classes)

    # Reference check: same in-kernel bf16 rounding of x and w, f32 accumulation.
    hs_bf = hs.astype(jnp.bfloat16).astype(jnp.float32)
    w_bf = weight.astype(jnp.bfloat16).astype(jnp.float32)
    for i in range(num_layers):
        ref = hs_bf[i] @ w_bf.T + bias
        assert jnp.allclose(out[i], ref, atol=1e-3, rtol=1e-3), (
            f"mismatch at layer {i}")

    print("KERNEL_OK")
</pallas_src>

<mosaic_0001>
module attributes {stable_mosaic.version = 11 : i64} {
  func.func @_cls_head_kernel(%arg0: i32, %arg1: memref<64x32xf32, #tpu.memory_space<vmem>>, %arg2: memref<32x2xbf16, #tpu.memory_space<vmem>>, %arg3: memref<1x2xf32, #tpu.memory_space<vmem>>, %arg4: memref<64x2xf32, #tpu.memory_space<vmem>>) attributes {dimension_semantics = [#tpu.dimension_semantics<parallel>], iteration_bounds = array<i64: 2>, scalar_prefetch = 0 : i64, scratch_operands = 0 : i64, tpu.core_type = #tpu.core_type<tc>, window_params = [{transform_indices = @transform_0, window_bounds = array<i64: 64, 32>}, {pipeline_mode = #tpu.pipeline_mode<synchronous>, transform_indices = @transform_1, window_bounds = array<i64: 32, 2>}, {pipeline_mode = #tpu.pipeline_mode<synchronous>, transform_indices = @transform_2, window_bounds = array<i64: 1, 2>}, {transform_indices = @transform_3, window_bounds = array<i64: 64, 2>}]} {
    %c0 = arith.constant 0 : index
    %c0_0 = arith.constant 0 : index
    %0 = vector.load %arg1[%c0, %c0_0] : memref<64x32xf32, #tpu.memory_space<vmem>>, vector<64x32xf32>
    %1 = arith.truncf %0 : vector<64x32xf32> to vector<64x32xbf16>
    %c0_1 = arith.constant 0 : index
    %c0_2 = arith.constant 0 : index
    %2 = vector.load %arg2[%c0_1, %c0_2] : memref<32x2xbf16, #tpu.memory_space<vmem>>, vector<32x2xbf16>
    %cst = arith.constant dense<0.000000e+00> : vector<64x2xf32>
    %3 = tpu.matmul %1, %2, %cst {dimension_numbers = #tpu.dot_dimension_numbers<[1], [0], [0], [1], [0, 0, 1, 1], [], []>} : vector<64x32xbf16>, vector<32x2xbf16>, vector<64x2xf32> -> vector<64x2xf32>
    %c0_3 = arith.constant 0 : index
    %c0_4 = arith.constant 0 : index
    %4 = vector.load %arg3[%c0_3, %c0_4] : memref<1x2xf32, #tpu.memory_space<vmem>>, vector<1x2xf32>
    %5 = vector.broadcast %4 : vector<1x2xf32> to vector<64x2xf32>
    %6 = arith.addf %3, %5 : vector<64x2xf32>
    %c0_5 = arith.constant 0 : index
    %c0_6 = arith.constant 0 : index
    %7 = vector.load %arg4[%c0_5, %c0_6] : memref<64x2xf32, #tpu.memory_space<vmem>>, vector<64x2xf32>
    tpu.vector_store %arg4[%c0_5, %c0_6], %6 {strides = array<i32>} : memref<64x2xf32, #tpu.memory_space<vmem>>, vector<64x2xf32>,
    return
  }
  func.func @transform_0(%arg0: i32) -> (i32, i32) {
    %c0_i32 = arith.constant 0 : i32
    %c0_i32_0 = arith.constant 0 : i32
    return %arg0, %c0_i32 : i32, i32
  }
  func.func @transform_1(%arg0: i32) -> (i32, i32) {
    %c0_i32 = arith.constant 0 : i32
    %c0_i32_0 = arith.constant 0 : i32
    %c0_i32_1 = arith.constant 0 : i32
    return %c0_i32, %c0_i32_0 : i32, i32
  }
  func.func @transform_2(%arg0: i32) -> (i32, i32) {
    %c0_i32 = arith.constant 0 : i32
    %c0_i32_0 = arith.constant 0 : i32
    %c0_i32_1 = arith.constant 0 : i32
    return %c0_i32, %c0_i32_0 : i32, i32
  }
  func.func @transform_3(%arg0: i32) -> (i32, i32) {
    %c0_i32 = arith.constant 0 : i32
    %c0_i32_0 = arith.constant 0 : i32
    return %arg0, %c0_i32 : i32, i32
  }
}

</mosaic_0001>

<bundles_post_ra>
// kernel: tpu_custom_call.1
= control target key start
LH: loop header
LB: loop body
LE: loop exit
PB: predicated region body
PF: predicated region fallthrough
CT: control target
= control target key end

     0   :  { %s812_s12 = smov 0   ;;  %s814_s13 = smov 0   ;;  %s938_s0 = inlined_call_operand.vmem [shape: f32[120,32], index: 0, kind: input, shape index: {}]   ;;  %s939_s1 = inlined_call_operand.vmem [shape: bf16[32,2], index: 1, kind: input, shape index: {}]   ;;  %s940_s2 = inlined_call_operand.vmem [shape: f32[1,2], index: 2, kind: input, shape index: {}]   ;;  %s941_s3 = inlined_call_operand.vmem [shape: f32[120,2], index: 3, kind: output, shape index: {}]  }
   0x1   :  { %s816_s14 = smov 0  }
   0x2 LB: > { %s825_s15 = sadd.s32 4294967295, %s758_s14   ;;  %s827_s16 = sadd.s32 1, %s758_s14   ;;  %s758_s14 = sphi %s816_s14, %s948_s14   ;;  %s754_s13 = sphi %s814_s13, %s947_s13   ;;  %s750_s12 = sphi %s812_s12, %s946_s12  }
   0x3   : > { %s85_s17 = ssub.s32 %s758_s14, %s827_s16  ;;  %s88_s18 = sadd.s32 1, %s754_s13 }
   0x4   : > { %p86_p0 = scmp.eq.s32.totalorder %s85_s17, 0  ;;  %p98_p1 = scmp.ne.s32.totalorder %s754_s13, %s750_s12 }
   0x5   : > { %p99_p2 = scmp.eq.s32.totalorder %s825_s15, 1  ;;  %p561_p3 = scmp.ge.s32.totalorder %s758_s14, 1 }
   0x6   : > { %s835_s19 = scalar_select %p86_p0, %s754_s13, %s88_s18  }
   0x7   : > { %p837_p4 = por %p99_p2, %p98_p1  ;;  %p146_p5 = scmp.lt.s32.totalorder %s758_s14, 3 }
   0x9   : > { %p147_p6 = pnand %p561_p3, %p146_p5 }
   0xa   : > { %v702_v0 = vld [vmem:[%s939_s1] sm:$0xff] (!%p147_p6)   ;;  %s845_s23 = sshll.u32 (!%p147_p6), %s825_s15, 3  ;;  %v703_v1 = vld [vmem:[%s939_s1 + $0x8] sm:$0xff] (!%p147_p6)   ;;  %vm228_vm0 = vcmask (!%p147_p6), 261120   ;;  %s170_s4 = sand.u32 (!%p147_p6), 1, %s750_s12   ;;  %vm306_vm1 = vcmask (!%p147_p6), 15360  }
   0xb   : > { %150 = sbr.rel (%p147_p6) target bundleno = 294 (0x126), region = 32  ;;  %p178_p7 = scmp.lt.s32.totalorder (!%p147_p6), %s845_s23, 14  ;;  %598 = vmatprep.subr.bf16.mxu0 (!%p147_p6), %v702_v0  ;;  %610 = vmatprep.subr.bf16.mxu1 (!%p147_p6), %v702_v0  ;;  %v565_v14 = vld [vmem:[%s940_s2] ss:$0 sm:$0xff] (!%p147_p6) }
   0xc   : > { %599 = vmatpush3.bf16.msra.mxu0 (!%p147_p6), %v702_v0  ;;  %612 = vmatpush3.bf16.msra.mxu1 (!%p147_p6), %v702_v0  ;;  %s562_s5 = sshll.u32 (!%p147_p6), %s170_s4, 6 }
   0xd   : > { %600 = vmatprep.subr.bf16.mxu0 (!%p147_p6), %v703_v1  ;;  %611 = vmatprep.subr.bf16.mxu1 (!%p147_p6), %v703_v1  ;;  %s859_s8 = scalar_lea.vmem (!%p147_p6), [#allocation2], %s562_s5  }
  0x10   : > { %601 = vmatpush3.bf16.msra.mxu0 (!%p147_p6), %v703_v1  ;;  %613 = vmatpush3.bf16.msra.mxu1 (!%p147_p6), %v703_v1 }
  0x12   : > { %s179_s26 = scalar_select %p178_p7, %s845_s23, 14 }
  0x13   : > { %s323_s9 = ssub.s32 (%p837_p4), 15, %s845_s23  ;;  %s589_s10 = sshll.u32 (%p837_p4), %s825_s15, 6 }
  0x14   : > { %s564_s27 = sshll.u32 %s179_s26, 3  ;;  %p324_p8 = scmp.lt.s32.totalorder (%p837_p4), %s323_s9, 8 }
  0x15   : > { %s181_s30 = scalar_lea.vmem %s938_s0, %s564_s27  ;;  %s884_s14 = scalar_lea.vmem (%p837_p4), %s941_s3, %s589_s10  }
  0x16   : > { %v193_v2 = vld [vmem:[%s181_s30] sm:$0xff]  ;;  %v194_v3 = vld [vmem:[%s181_s30 + $0x8] sm:$0xff]  ;;  %v195_v7 = vld [vmem:[%s181_s30 + $0x10] sm:$0xff] }
  0x17   : > { %v197_v4 = vld [vmem:[%s181_s30 + $0x20] sm:$0xff]  ;;  %v201_v5 = vpack.c.bf16 %v194_v3, %v193_v2  ;;  %v198_v6 = vld [vmem:[%s181_s30 + $0x28] sm:$0xff]  ;;  %v196_v8 = vld [vmem:[%s181_s30 + $0x18] sm:$0xff] }
  0x18   : > { %v203_v9 = vpack.c.bf16 %v198_v6, %v197_v4  ;;  %v202_v10 = vpack.c.bf16 %v196_v8, %v195_v7  ;;  %v199_v11 = vld [vmem:[%s181_s30 + $0x30] sm:$0xff]  ;;  %v200_v12 = vld [vmem:[%s181_s30 + $0x38] sm:$0xff] }
  0x19   : > { %602 = vmatprep.mubr.msk.bf16.mxu0 %vm228_vm0, %v201_v5  ;;  %v204_v13 = vpack.c.bf16 %v200_v12, %v199_v11 }
  0x1a   : > { %606 = vmatprep.mubr.msk.bf16.mxu1 %vm228_vm0, %v203_v9  ;;  %603 = vmatmul.mubr.msk.bf16.vlgmr.msra.gmra.mrb[0].mxu0 %vm228_vm0, %v202_v10 }
  0x1b   : > { %607 = vmatmul.mubr.msk.bf16.vlgmr.msra.gmra.mrb[0].mxu1 %vm228_vm0, %v204_v13 }
  0xed   : > { %v604_v15 = vpop.f32.mrb[0].mxu0 }
  0xee   : > { %v284_v16 = vadd.f32 %v604_v15, %v565_v14  ;;  %v608_v17 = vpop.f32.mrb[0].mxu1  ;;  %v275_v18 = vpop.f32.mrb[1].mxu0  ;;  %321 = sbr.rel (!%p837_p4) target bundleno = 294 (0x126), region = 36 }
  0xef   : > { %v300_v19 = vadd.f32 %v608_v17, %v565_v14  ;;  %v276_v20 = vadd.f32 %v565_v14, %v275_v18  ;;  %v291_v21 = vpop.f32.mrb[1].mxu1  ;;  %v605_v22 = vpop.f32.mrb[2].mxu0 }
  0xf0   : > { %309 = vst.msk [vmem:[%s859_s8 + $0x10] sm:$0xff] %vm306_vm1, %v284_v16  ;;  %v292_v23 = vadd.f32 %v565_v14, %v291_v21  ;;  %v287_v24 = vadd.f32 %v605_v22, %v565_v14  ;;  %v609_v25 = vpop.f32.mrb[2].mxu1  ;;  %v278_v26 = vpop.f32.mrb[3].mxu0 }
  0xf1   : > { %313 = vst.msk [vmem:[%s859_s8 + $0x30] sm:$0xff] %vm306_vm1, %v300_v19  ;;  %307 = vst.msk [vmem:[%s859_s8] sm:$0xff] %vm306_vm1, %v276_v20  ;;  %v303_v27 = vadd.f32 %v609_v25, %v565_v14  ;;  %v279_v28 = vadd.f32 %v565_v14, %v278_v26  ;;  %v294_v29 = vpop.f32.mrb[3].mxu1 }
  0xf2   : > { %311 = vst.msk [vmem:[%s859_s8 + $0x20] sm:$0xff] %vm306_vm1, %v292_v23  ;;  %310 = vst.msk [vmem:[%s859_s8 + $0x18] sm:$0xff] %vm306_vm1, %v287_v24  ;;  %v295_v30 = vadd.f32 %v565_v14, %v294_v29 }
  0xf3   : > { %314 = vst.msk [vmem:[%s859_s8 + $0x38] sm:$0xff] %vm306_vm1, %v303_v27  ;;  %308 = vst.msk [vmem:[%s859_s8 + $0x8] sm:$0xff] %vm306_vm1, %v279_v28 }
  0xf4   : > { %312 = vst.msk [vmem:[%s859_s8 + $0x28] sm:$0xff] %vm306_vm1, %v295_v30 }
  0xf5   : > { %s950_s9 = smov (!%p324_p8, %s323_s9), 8 }
  0xf6   : > { %s574_s17 = sshll.u32 %s950_s9, 7 }
  0xf7   : > { %p577_p9 = scmp.eq.s32.totalorder %s574_s17, 0 }
  0xf8   : > { %s890_s18 = sshrl.u32 (!%p577_p9), %s950_s9, 3 }
  0xf9   : > { %332 = sbr.rel (%p577_p9) target bundleno = 294 (0x126), region = 40  ;;  %p578_p10 = scmp.le.s32.totalorder (!%p577_p9), %s890_s18, 0 }
 0x100   : > { %514 = sbr.rel (%p578_p10) target bundleno = 273 (0x111), region = 116  ;;  %s943_s15 = smov (!%p578_p10), %s884_s14 }
 0x101   : > { %s944_s20 = smov (!%p578_p10), %s859_s8  ;;  %s899_s21 = smov (!%p578_p10), 0  }
 0x102   : > { %s901_s22 = smov (!%p578_p10), 0  }
 0x107 LB: >> { %v408_v31 = vld [vmem:[%s766_s20] sm:$0xff]  ;;  %v410_v32 = vld [vmem:[%s766_s20 + $0x8] sm:$0xff]  ;;  %v412_v33 = vld [vmem:[%s766_s20 + $0x10] sm:$0xff]  ;;  %s424_s23 = sadd.s32 1, %s770_s21  ;;  %s402_s22 = sadd.s32 1, %s774_s22   ;;  %s774_s22 = sphi %s901_s22, %s402_s22   ;;  %s770_s21 = sphi %s899_s21, %s945_s21   ;;  %s766_s20 = sphi %s944_s20, %s429_s20   ;;  %s762_s15 = sphi %s943_s15, %s430_s15  }
 0x108   : >> { %409 = vst [vmem:[%s762_s15] sm:$0xff] %v408_v31  ;;  %411 = vst [vmem:[%s762_s15 + $0x8] sm:$0xff] %v410_v32  ;;  %v414_v34 = vld [vmem:[%s766_s20 + $0x18] sm:$0xff]  ;;  %v416_v35 = vld [vmem:[%s766_s20 + $0x20] sm:$0xff]  ;;  %p425_p11 = scmp.ge.s32.totalorder %s424_s23, %s890_s18  ;;  %p401_p12 = scmp.ge.s32.totalorder %s402_s22, %s890_s18 }
 0x109   : >> { %413 = vst [vmem:[%s762_s15 + $0x10] sm:$0xff] %v412_v33  ;;  %v418_v36 = vld [vmem:[%s766_s20 + $0x28] sm:$0xff]  ;;  %415 = vst [vmem:[%s762_s15 + $0x18] sm:$0xff] %v414_v34  ;;  %v420_v37 = vld [vmem:[%s766_s20 + $0x30] sm:$0xff] }
 0x10a   : >> { %417 = vst [vmem:[%s762_s15 + $0x20] sm:$0xff] %v416_v35  ;;  %419 = vst [vmem:[%s762_s15 + $0x28] sm:$0xff] %v418_v36  ;;  %v422_v38 = vld [vmem:[%s766_s20 + $0x38] sm:$0xff]  ;;  %s952_s23 = smov (%p425_p11, %s424_s23), 0  ;;  %404 = sbr.rel (!%p401_p12) target bundleno = 263 (0x107), region = 122 }
 0x10b   : >> { %421 = vst [vmem:[%s762_s15 + $0x30] sm:$0xff] %v420_v37  ;;  %423 = vst [vmem:[%s762_s15 + $0x38] sm:$0xff] %v422_v38  ;;  %s579_s24 = sshll.u32 %s952_s23, 6  ;;  %s945_s21 = smov %s952_s23 }
 0x10c   : >> { %s429_s20 = scalar_lea.vmem %s859_s8, %s579_s24 [#allocation2]   ;;  %s430_s15 = scalar_lea.vmem %s884_s14, %s579_s24  }
 0x111 PF: > { %s920_s25 = sand.u32 7, %s950_s9   ;;  %s590_s26 = sshll.u32 %s890_s18, 6 }
 0x112   : > { %s435_s27 = scalar_lea.vmem %s859_s8, %s590_s26 [#allocation2]   ;;  %s437_s28 = scalar_lea.vmem %s884_s14, %s590_s26  }
 0x113   : > { %p584_p13 = scmp.le.s32.totalorder %s920_s25, 0 }
 0x114   : > { %s776_s29 = smov (!%p584_p13), %s437_s28   ;;  %s780_s30 = smov (!%p584_p13), %s435_s27  }
 0x115   : > { %528 = sbr.rel (%p584_p13) target bundleno = 294 (0x126), region = 127  ;;  %s784_s4 = smov (!%p584_p13), 0  }
 0x116   : > { %s788_s5 = smov (!%p584_p13), 0  }
 0x11c LB: >> { %v447_v39 = vld [vmem:[%s782_s30] sm:$0xff]  ;;  %s449_s6 = sadd.s32 1, %s786_s4  ;;  %s441_s5 = sadd.s32 1, %s790_s5   ;;  %s790_s5 = sphi %s788_s5, %s441_s5   ;;  %s786_s4 = sphi %s784_s4, %s785_s4   ;;  %s782_s30 = sphi %s780_s30, %s454_s30   ;;  %s778_s29 = sphi %s776_s29, %s455_s29  }
 0x11d   : >> { %448 = vst [vmem:[%s778_s29] sm:$0xff] %v447_v39  ;;  %p450_p0 = scmp.ge.s32.totalorder %s449_s6, %s920_s25  ;;  %p440_p1 = scmp.ge.s32.totalorder %s441_s5, %s920_s25 }
 0x11f   : >> { %s954_s6 = smov (%p450_p0, %s449_s6), 0  ;;  %443 = sbr.rel (!%p440_p1) target bundleno = 284 (0x11c), region = 133 }
 0x120   : >> { %s585_s7 = sshll.u32 %s954_s6, 3  ;;  %s785_s4 = smov %s954_s6  }
 0x121   : >> { %s454_s30 = scalar_lea.vmem %s435_s27, %s585_s7 [#allocation2]   ;;  %s455_s29 = scalar_lea.vmem %s437_s28, %s585_s7  }
 0x126 PF: > { %p10_p2 = scmp.ge.s32.totalorder %s827_s16, 4   ;;  %s946_s12 = smov %s754_s13 }
 0x127   : > { %s947_s13 = smov %s835_s19  ;;  %s948_s14 = smov %s827_s16 }
 0x128   :  { %12 = sbr.rel (!%p10_p2) target bundleno = 2 (0x2), region = 144 }

</bundles_post_ra>
